<compile_context>
chip_gen: v5e
topology: v5e:2x2
jax: 0.10.0
libtpu: 0.0.40
codegen_flags: <defaults>
</compile_context>

<pallas_src>
import jax
import jax.numpy as jnp
import numpy as np
from jax.experimental import pallas as pl
from jax.experimental.pallas import tpu as pltpu


# ------------------------------------------------------------------
# Fused forward kernel.
# ------------------------------------------------------------------
def rgcn_fused_kernel(x_ref, aflat_ref, w1_ref, ws1_ref, b1_ref,
                      w2_ref, ws2_ref, b2_ref, fcw_ref, fcb_ref, o_ref):
    num_rel = w1_ref.shape[0]
    n_nodes = x_ref.shape[0]

    a_flat = aflat_ref[...]                       # (N, R*N): column block r == A[r]

    def rel_conv(h, w_ref, ws_ref, b_ref):
        # Per-relation message transform (tiny matmuls, statically unrolled over R),
        # stacked row-wise so relation aggregation becomes ONE MXU matmul.
        xw_stack = jnp.concatenate(
            [jnp.dot(h, w_ref[r], preferred_element_type=jnp.float32)
             for r in range(num_rel)],
            axis=0)                                               # (R*N, Fout)
        agg = jnp.dot(a_flat, xw_stack,
                      preferred_element_type=jnp.float32)         # (N, Fout)
        self_term = jnp.dot(h, ws_ref[...],
                            preferred_element_type=jnp.float32)   # (N, Fout)
        return jnp.maximum(agg + self_term + b_ref[...], 0.0)     # bias + ReLU

    h = rel_conv(x_ref[...], w1_ref, ws1_ref, b1_ref)   # layer 1 (dropout1 = identity)
    h = rel_conv(h, w2_ref, ws2_ref, b2_ref)            # layer 2 (dropout2 = identity)

    # Global mean pool over the true node count, then Linear(H, 1) + Sigmoid.
    pooled = jnp.sum(h, axis=0, keepdims=True) * (1.0 / n_nodes)          # (1, H)
    logit = jnp.sum(pooled * fcw_ref[...], axis=1, keepdims=True) + fcb_ref[0]
    o_ref[...] = (1.0 / (1.0 + jnp.exp(-logit))).astype(o_ref.dtype)      # (1, 1)


def rgcn_forward(params, x, a):
    """x: (N, Fin) f32, a: (R, N, N) f32 with a[r, dst, src] = edge multiplicity."""
    R, N, _ = a.shape

    # Lay A out once as (N, R*N) (column block r == A[r]) so the in-kernel
    # relation aggregation is a single matmul rather than a grid loop over R.
    a_flat = jnp.transpose(a, (1, 0, 2)).reshape(N, R * N)
    fcw_row = params["fc_w"].T                 # (1, H): lane-dense row vector
    fcb = params["fc_b"].reshape((1,))         # scalar -> SMEM

    vmem = pl.BlockSpec(memory_space=pltpu.MemorySpace.VMEM)
    smem = pl.BlockSpec(memory_space=pltpu.MemorySpace.SMEM)

    return pl.pallas_call(
        rgcn_fused_kernel,
        out_shape=jax.ShapeDtypeStruct((1, 1), jnp.float32),
        in_specs=[vmem, vmem,                  # x, a_flat
                  vmem, vmem, vmem,            # w1, w_self1, b1
                  vmem, vmem, vmem,            # w2, w_self2, b2
                  vmem, smem],                 # fc_w (1,H), fc_b scalar
        out_specs=vmem,
    )(x, a_flat,
      params["w1"], params["wself1"], params["b1"],
      params["w2"], params["wself2"], params["b2"],
      fcw_row, fcb)


# ------------------------------------------------------------------
# Pure-JAX reference for a correctness check.
# ------------------------------------------------------------------
def rgcn_reference(params, x, a):
    def conv(x, w, w_self, b):
        xw = jnp.einsum("nf,rfo->rno", x, w)       # (R, N, Fout)
        agg = jnp.einsum("rij,rjo->io", a, xw)     # (N, Fout)
        return jax.nn.relu(agg + x @ w_self + b)

    h = conv(x, params["w1"], params["wself1"], params["b1"])
    h = conv(h, params["w2"], params["wself2"], params["b2"])
    pooled = jnp.mean(h, axis=0, keepdims=True)
    return jax.nn.sigmoid(pooled @ params["fc_w"] + params["fc_b"])


if __name__ == "__main__":
    # Small deterministic problem: one graph with N nodes, R edge types.
    N = 16            # nodes
    IN_F = 8          # in_features
    HID = 32          # hidden_features
    R = 3             # num_edge_types
    # dropout = 0.1   # unused at inference (identity)

    key = jax.random.PRNGKey(0)
    k_x, k_w1, k_s1, k_w2, k_s2, k_fc = jax.random.split(key, 6)

    # Node features.
    x = jax.random.normal(k_x, (N, IN_F), dtype=jnp.float32)

    # Deterministic graph: ring edges + a few chords; edge type = (src + dst) % R.
    edges = [(i, (i + 1) % N) for i in range(N)] + [(i, (i + 5) % N) for i in range(0, N, 2)]
    A = np.zeros((R, N, N), dtype=np.float32)
    for (src, dst) in edges:
        A[(src + dst) % R, dst, src] += 1.0   # A[r, dst, src]: sum-aggregation of incoming msgs
    a = jnp.asarray(A)

    # Deterministic parameter init (synthetic; shapes match RelGraphConv / Linear).
    params = {
        "w1":     0.1 * jax.random.normal(k_w1, (R, IN_F, HID), dtype=jnp.float32),
        "wself1": 0.1 * jax.random.normal(k_s1, (IN_F, HID), dtype=jnp.float32),
        "b1":     jnp.zeros((1, HID), dtype=jnp.float32),
        "w2":     0.1 * jax.random.normal(k_w2, (R, HID, HID), dtype=jnp.float32),
        "wself2": 0.1 * jax.random.normal(k_s2, (HID, HID), dtype=jnp.float32),
        "b2":     jnp.zeros((1, HID), dtype=jnp.float32),
        "fc_w":   0.1 * jax.random.normal(k_fc, (HID, 1), dtype=jnp.float32),
        "fc_b":   jnp.zeros((1, 1), dtype=jnp.float32),
    }

    out = jax.block_until_ready(rgcn_forward(params, x, a))
    ref = jax.block_until_ready(rgcn_reference(params, x, a))

    assert out.shape == (1, 1), out.shape
    np.testing.assert_allclose(np.asarray(out), np.asarray(ref), rtol=1e-5, atol=1e-5)
    print("KERNEL_OK")
</pallas_src>

<mosaic_0001>
module attributes {stable_mosaic.version = 11 : i64} {
  func.func @rgcn_fused_kernel(%arg0: memref<16x8xf32, #tpu.memory_space<vmem>>, %arg1: memref<16x48xf32, #tpu.memory_space<vmem>>, %arg2: memref<3x8x32xf32, #tpu.memory_space<vmem>>, %arg3: memref<8x32xf32, #tpu.memory_space<vmem>>, %arg4: memref<1x32xf32, #tpu.memory_space<vmem>>, %arg5: memref<3x32x32xf32, #tpu.memory_space<vmem>>, %arg6: memref<32x32xf32, #tpu.memory_space<vmem>>, %arg7: memref<1x32xf32, #tpu.memory_space<vmem>>, %arg8: memref<1x32xf32, #tpu.memory_space<vmem>>, %arg9: memref<1xf32, #tpu.memory_space<smem>>, %arg10: memref<1x1xf32, #tpu.memory_space<vmem>>) attributes {dimension_semantics = [], scalar_prefetch = 0 : i64, scratch_operands = 0 : i64, tpu.core_type = #tpu.core_type<tc>} {
    %c0 = arith.constant 0 : index
    %c0_0 = arith.constant 0 : index
    %0 = vector.load %arg1[%c0, %c0_0] : memref<16x48xf32, #tpu.memory_space<vmem>>, vector<16x48xf32>
    %c0_1 = arith.constant 0 : index
    %c0_2 = arith.constant 0 : index
    %1 = vector.load %arg0[%c0_1, %c0_2] : memref<16x8xf32, #tpu.memory_space<vmem>>, vector<16x8xf32>
    %c0_3 = arith.constant 0 : index
    %c0_4 = arith.constant 0 : index
    %c0_5 = arith.constant 0 : index
    %2 = vector.load %arg2[%c0_3, %c0_4, %c0_5] : memref<3x8x32xf32, #tpu.memory_space<vmem>>, vector<1x8x32xf32>
    %3 = vector.shape_cast %2 : vector<1x8x32xf32> to vector<8x32xf32>
    %cst = arith.constant dense<0.000000e+00> : vector<16x32xf32>
    %4 = tpu.matmul %1, %3, %cst {dimension_numbers = #tpu.dot_dimension_numbers<[1], [0], [0], [1], [0, 0, 1, 1], [], []>} : vector<16x8xf32>, vector<8x32xf32>, vector<16x32xf32> -> vector<16x32xf32>
    %c1 = arith.constant 1 : index
    %c0_6 = arith.constant 0 : index
    %c0_7 = arith.constant 0 : index
    %5 = vector.load %arg2[%c1, %c0_6, %c0_7] : memref<3x8x32xf32, #tpu.memory_space<vmem>>, vector<1x8x32xf32>
    %6 = vector.shape_cast %5 : vector<1x8x32xf32> to vector<8x32xf32>
    %cst_8 = arith.constant dense<0.000000e+00> : vector<16x32xf32>
    %7 = tpu.matmul %1, %6, %cst_8 {dimension_numbers = #tpu.dot_dimension_numbers<[1], [0], [0], [1], [0, 0, 1, 1], [], []>} : vector<16x8xf32>, vector<8x32xf32>, vector<16x32xf32> -> vector<16x32xf32>
    %c2 = arith.constant 2 : index
    %c0_9 = arith.constant 0 : index
    %c0_10 = arith.constant 0 : index
    %8 = vector.load %arg2[%c2, %c0_9, %c0_10] : memref<3x8x32xf32, #tpu.memory_space<vmem>>, vector<1x8x32xf32>
    %9 = vector.shape_cast %8 : vector<1x8x32xf32> to vector<8x32xf32>
    %cst_11 = arith.constant dense<0.000000e+00> : vector<16x32xf32>
    %10 = tpu.matmul %1, %9, %cst_11 {dimension_numbers = #tpu.dot_dimension_numbers<[1], [0], [0], [1], [0, 0, 1, 1], [], []>} : vector<16x8xf32>, vector<8x32xf32>, vector<16x32xf32> -> vector<16x32xf32>
    %11 = tpu.concatenate %4, %7, %10 in 0 : vector<16x32xf32>, vector<16x32xf32>, vector<16x32xf32> -> vector<48x32xf32>
    %cst_12 = arith.constant dense<0.000000e+00> : vector<16x32xf32>
    %12 = tpu.matmul %0, %11, %cst_12 {dimension_numbers = #tpu.dot_dimension_numbers<[1], [0], [0], [1], [0, 0, 1, 1], [], []>} : vector<16x48xf32>, vector<48x32xf32>, vector<16x32xf32> -> vector<16x32xf32>
    %c0_13 = arith.constant 0 : index
    %c0_14 = arith.constant 0 : index
    %13 = vector.load %arg3[%c0_13, %c0_14] : memref<8x32xf32, #tpu.memory_space<vmem>>, vector<8x32xf32>
    %cst_15 = arith.constant dense<0.000000e+00> : vector<16x32xf32>
    %14 = tpu.matmul %1, %13, %cst_15 {dimension_numbers = #tpu.dot_dimension_numbers<[1], [0], [0], [1], [0, 0, 1, 1], [], []>} : vector<16x8xf32>, vector<8x32xf32>, vector<16x32xf32> -> vector<16x32xf32>
    %15 = arith.addf %12, %14 : vector<16x32xf32>
    %c0_16 = arith.constant 0 : index
    %c0_17 = arith.constant 0 : index
    %16 = vector.load %arg4[%c0_16, %c0_17] : memref<1x32xf32, #tpu.memory_space<vmem>>, vector<1x32xf32>
    %17 = vector.broadcast %16 : vector<1x32xf32> to vector<16x32xf32>
    %18 = arith.addf %15, %17 : vector<16x32xf32>
    %cst_18 = arith.constant 0.000000e+00 : f32
    %19 = vector.broadcast %cst_18 : f32 to vector<16x32xf32>
    %20 = arith.maximumf %18, %19 : vector<16x32xf32>
    %c0_19 = arith.constant 0 : index
    %c0_20 = arith.constant 0 : index
    %c0_21 = arith.constant 0 : index
    %21 = vector.load %arg5[%c0_19, %c0_20, %c0_21] : memref<3x32x32xf32, #tpu.memory_space<vmem>>, vector<1x32x32xf32>
    %22 = vector.shape_cast %21 : vector<1x32x32xf32> to vector<32x32xf32>
    %cst_22 = arith.constant dense<0.000000e+00> : vector<16x32xf32>
    %23 = tpu.matmul %20, %22, %cst_22 {dimension_numbers = #tpu.dot_dimension_numbers<[1], [0], [0], [1], [0, 0, 1, 1], [], []>} : vector<16x32xf32>, vector<32x32xf32>, vector<16x32xf32> -> vector<16x32xf32>
    %c1_23 = arith.constant 1 : index
    %c0_24 = arith.constant 0 : index
    %c0_25 = arith.constant 0 : index
    %24 = vector.load %arg5[%c1_23, %c0_24, %c0_25] : memref<3x32x32xf32, #tpu.memory_space<vmem>>, vector<1x32x32xf32>
    %25 = vector.shape_cast %24 : vector<1x32x32xf32> to vector<32x32xf32>
    %cst_26 = arith.constant dense<0.000000e+00> : vector<16x32xf32>
    %26 = tpu.matmul %20, %25, %cst_26 {dimension_numbers = #tpu.dot_dimension_numbers<[1], [0], [0], [1], [0, 0, 1, 1], [], []>} : vector<16x32xf32>, vector<32x32xf32>, vector<16x32xf32> -> vector<16x32xf32>
    %c2_27 = arith.constant 2 : index
    %c0_28 = arith.constant 0 : index
    %c0_29 = arith.constant 0 : index
    %27 = vector.load %arg5[%c2_27, %c0_28, %c0_29] : memref<3x32x32xf32, #tpu.memory_space<vmem>>, vector<1x32x32xf32>
    %28 = vector.shape_cast %27 : vector<1x32x32xf32> to vector<32x32xf32>
    %cst_30 = arith.constant dense<0.000000e+00> : vector<16x32xf32>
    %29 = tpu.matmul %20, %28, %cst_30 {dimension_numbers = #tpu.dot_dimension_numbers<[1], [0], [0], [1], [0, 0, 1, 1], [], []>} : vector<16x32xf32>, vector<32x32xf32>, vector<16x32xf32> -> vector<16x32xf32>
    %30 = tpu.concatenate %23, %26, %29 in 0 : vector<16x32xf32>, vector<16x32xf32>, vector<16x32xf32> -> vector<48x32xf32>
    %cst_31 = arith.constant dense<0.000000e+00> : vector<16x32xf32>
    %31 = tpu.matmul %0, %30, %cst_31 {dimension_numbers = #tpu.dot_dimension_numbers<[1], [0], [0], [1], [0, 0, 1, 1], [], []>} : vector<16x48xf32>, vector<48x32xf32>, vector<16x32xf32> -> vector<16x32xf32>
    %c0_32 = arith.constant 0 : index
    %c0_33 = arith.constant 0 : index
    %32 = vector.load %arg6[%c0_32, %c0_33] : memref<32x32xf32, #tpu.memory_space<vmem>>, vector<32x32xf32>
    %cst_34 = arith.constant dense<0.000000e+00> : vector<16x32xf32>
    %33 = tpu.matmul %20, %32, %cst_34 {dimension_numbers = #tpu.dot_dimension_numbers<[1], [0], [0], [1], [0, 0, 1, 1], [], []>} : vector<16x32xf32>, vector<32x32xf32>, vector<16x32xf32> -> vector<16x32xf32>
    %34 = arith.addf %31, %33 : vector<16x32xf32>
    %c0_35 = arith.constant 0 : index
    %c0_36 = arith.constant 0 : index
    %35 = vector.load %arg7[%c0_35, %c0_36] : memref<1x32xf32, #tpu.memory_space<vmem>>, vector<1x32xf32>
    %36 = vector.broadcast %35 : vector<1x32xf32> to vector<16x32xf32>
    %37 = arith.addf %34, %36 : vector<16x32xf32>
    %cst_37 = arith.constant 0.000000e+00 : f32
    %38 = vector.broadcast %cst_37 : f32 to vector<16x32xf32>
    %39 = arith.maximumf %37, %38 : vector<16x32xf32>
    %cst_38 = arith.constant dense<0.000000e+00> : vector<32xf32>
    %40 = vector.multi_reduction <add>, %39, %cst_38 [0] : vector<16x32xf32> to vector<32xf32>
    %41 = vector.shape_cast %40 : vector<32xf32> to vector<1x32xf32>
    %cst_39 = arith.constant 6.250000e-02 : f32
    %42 = vector.broadcast %cst_39 : f32 to vector<1x32xf32>
    %43 = arith.mulf %41, %42 : vector<1x32xf32>
    %c0_40 = arith.constant 0 : index
    %c0_41 = arith.constant 0 : index
    %44 = vector.load %arg8[%c0_40, %c0_41] : memref<1x32xf32, #tpu.memory_space<vmem>>, vector<1x32xf32>
    %45 = arith.mulf %43, %44 : vector<1x32xf32>
    %cst_42 = arith.constant dense<0.000000e+00> : vector<1xf32>
    %46 = vector.multi_reduction <add>, %45, %cst_42 [1] : vector<1x32xf32> to vector<1xf32>
    %47 = vector.shape_cast %46 : vector<1xf32> to vector<1x1xf32>
    %c0_43 = arith.constant 0 : index
    %48 = memref.load %arg9[%c0_43] : memref<1xf32, #tpu.memory_space<smem>>
    %49 = vector.broadcast %48 : f32 to vector<1x1xf32>
    %50 = arith.addf %47, %49 : vector<1x1xf32>
    %cst_44 = arith.constant 0.000000e+00 : f32
    %51 = vector.broadcast %cst_44 : f32 to vector<1x1xf32>
    %52 = arith.subf %51, %50 : vector<1x1xf32>
    %53 = math.exp %52 : vector<1x1xf32>
    %cst_45 = arith.constant 1.000000e+00 : f32
    %54 = vector.broadcast %cst_45 : f32 to vector<1x1xf32>
    %55 = arith.addf %54, %53 : vector<1x1xf32>
    %cst_46 = arith.constant 1.000000e+00 : f32
    %56 = vector.broadcast %cst_46 : f32 to vector<1x1xf32>
    %57 = arith.divf %56, %55 : vector<1x1xf32>
    %c0_47 = arith.constant 0 : index
    %c0_48 = arith.constant 0 : index
    %58 = vector.load %arg10[%c0_47, %c0_48] : memref<1x1xf32, #tpu.memory_space<vmem>>, vector<1x1xf32>
    tpu.vector_store %arg10[%c0_47, %c0_48], %57 {strides = array<i32>} : memref<1x1xf32, #tpu.memory_space<vmem>>, vector<1x1xf32>,
    return
  }
}

</mosaic_0001>

<bundles_post_ra>
// kernel: tpu_custom_call.1
= control target key start
LH: loop header
LB: loop body
LE: loop exit
PB: predicated region body
PF: predicated region fallthrough
CT: control target
= control target key end

     0   :  { %16 = vsyncpa [#allocation4], 0  ;;  %s756_s0 = inlined_call_operand.vmem [shape: f32[16,8], index: 0, kind: input, shape index: {}]   ;;  %s757_s1 = inlined_call_operand.hbm [shape: f32[16,48], index: 1, kind: input, shape index: {}]   ;;  %s758_s2 = inlined_call_operand.vmem [shape: f32[3,8,32], index: 2, kind: input, shape index: {}]   ;;  %s759_s3 = inlined_call_operand.hbm [shape: f32[8,32], index: 3, kind: input, shape index: {}]   ;;  %s760_s4 = inlined_call_operand.vmem [shape: f32[1,32], index: 4, kind: input, shape index: {}]   ;;  %s761_s5 = inlined_call_operand.hbm [shape: f32[3,32,32], index: 5, kind: input, shape index: {}]   ;;  %s762_s6 = inlined_call_operand.hbm [shape: f32[32,32], index: 6, kind: input, shape index: {}]   ;;  %s763_s7 = inlined_call_operand.vmem [shape: f32[1,32], index: 7, kind: input, shape index: {}]   ;;  %s764_s8 = inlined_call_operand.vmem [shape: f32[1,32], index: 8, kind: input, shape index: {}]   ;;  %s765_s9 = inlined_call_operand.<no memory space> [shape: f32[1], index: 9, kind: input, shape index: {}]   ;;  %s766_s10 = inlined_call_operand.hbm [shape: f32[1,1], index: 10, kind: output, shape index: {}]  }
   0x1   :  { %17 = vsyncpa [#allocation7], 0 }
   0x2   :  { %18 = vsyncpa [#allocation10], 0  ;;  %s42_s15 = sshll.u32 %s759_s3, 4  ;;  %s43_s15 = int_to_ptr.hbm [resolvable:$true] %s42_s15 }
   0x3   :  { %19 = vsyncpa [#allocation5], 0  ;;  %s622_s16 = smov [#allocation6]   ;;  %s26_s20 = sshll.u32 %s757_s1, 4  ;;  %s27_s20 = int_to_ptr.hbm [resolvable:$true] %s26_s20 }
   0x4   :  { %s44_s17 = sshll.u32 %s622_s16, 4  ;;  %s623_s21 = smov [#allocation3]   ;;  %s45_s17 = int_to_ptr.vmem [resolvable:$true] %s44_s17 }
   0x5   :  { %47 = dma.hbm_to_vmem [thread:$0]  %s43_s15, 128, %s45_s17, [#allocation7]  }
   0x6   :  { %s28_s22 = sshll.u32 %s623_s21, 4  ;;  %s624_s23 = smov 128   ;;  %s29_s22 = int_to_ptr.vmem [resolvable:$true] %s28_s22 }
   0x7   :  { %s625_s24 = smov 8   ;;  %s54_s3 = sshll.u32 %s761_s5, 4  ;;  %s55_s3 = int_to_ptr.hbm [resolvable:$true] %s54_s3 }
   0x8   :  { %34 = dma.hbm_to_vmem [thread:$0]  %s27_s20, 256, %s29_s22, [#allocation4], %s624_s23, %s624_s23, %s625_s24  }
   0x9   :  { %s626_s27 = smov [#allocation8]   ;;  %s67_s1 = sshll.u32 %s762_s6, 4  ;;  %s68_s1 = int_to_ptr.hbm [resolvable:$true] %s67_s1 }
   0xa   :  { %s56_s28 = sshll.u32 %s626_s27, 4  ;;  %s627_s11 = smov [#allocation9]   ;;  %s57_s28 = int_to_ptr.vmem [resolvable:$true] %s56_s28 }
   0xb   :  { %62 = dma.hbm_to_vmem [thread:$0]  %s55_s3, 1536, %s57_s28, [#allocation7], %s624_s23, %s624_s23, %s625_s24  }
   0xc   :  { %s69_s12 = sshll.u32 %s627_s11, 4  ;;  %s70_s12 = int_to_ptr.vmem [resolvable:$true] %s69_s12 }
   0xd   :  { %75 = dma.hbm_to_vmem [thread:$0]  %s68_s1, 512, %s70_s12, [#allocation10], %s624_s23, %s624_s23, %s625_s24  }
   0xe   :  { %614 = dma.done.wait [#allocation4], 256  }
   0xf   :  { %615 = vsyncadd [#allocation4], 4294967040 }
  0x10   :  { %616 = dma.done.wait [#allocation7], 1664  }
  0x11   :  { %617 = vsyncadd [#allocation7], 4294965632 }
  0x12   :  { %618 = dma.done.wait [#allocation10], 512  }
  0x13   :  { %619 = vsyncadd [#allocation10], 4294966784  ;;  %vm103_vm0 = vcmask 64512   ;;  %v457_v0 = vld [vmem:[%s758_s2 + $0x10] sm:$0xff]  ;;  %v100_v1 = vld [vmem:[%s756_s0] sm:$0xff]  ;;  %vm207_vm1 = vcmask 392192  }
  0x14   :  { %175 = vmatpush.msra.mxu2 %v457_v0  ;;  %v454_v2 = vld [vmem:[%s758_s2 + $0x8] sm:$0xff]  ;;  %v102_v3 = vld [vmem:[%s758_s2] sm:$0xff]  ;;  %v183_v5 = vld [vmem:[#allocation6] sm:$0xff]  ;;  %vm249_vm2 = vcmask 261120   ;;  %vm405_vm3 = vcmask 253952   ;;  %vm431_vm7 = vcmask 0  }
  0x15   :  { %458 = vmatmul.msk.f32.vlgmr.msra.gmra.mxu2 %vm103_vm0, %v100_v1  ;;  %v101_v4 = vld [vmem:[%s756_s0 + $0x8] sm:$0xff]  ;;  %474 = vmatpush.msra.mxu3 %v454_v2  ;;  %v311_v6 = vld [vmem:[#allocation8 + $0x58] sm:$0xff]  ;;  %v719_v13 = vld [vmem:[#allocation3] sm:$0xff] }
  0x16   :  { %456 = vmatmul.msk.f32.vlgmr.msra.gmra.mxu3 %vm103_vm0, %v101_v4  ;;  %125 = vmatpush.msra.mxu0 %v102_v3  ;;  %v721_v14 = vld [vmem:[#allocation3 + $0x8] sm:$0xff]  ;;  %v248_v15 = vld [vmem:[#allocation8 + $0x18] sm:$0xff]  ;;  %v246_v22 = vld [vmem:[#allocation8 + $0x8] sm:$0xff] }
  0x17   :  { %452 = vmatmul.msk.f32.vlgmr.msra.gmra.mxu0 %vm103_vm0, %v100_v1  ;;  %150 = vmatpush.msra.mxu1 %v454_v2  ;;  %v283_v16 = vld [vmem:[#allocation8 + $0x38] sm:$0xff]  ;;  %v310_v18 = vld [vmem:[#allocation8 + $0x50] sm:$0xff]  ;;  %v281_v23 = vld [vmem:[#allocation8 + $0x28] sm:$0xff] }
  0x18   :  { %455 = vmatmul.msk.f32.vlgmr.msra.gmra.mxu1 %vm103_vm0, %v100_v1  ;;  %199 = vmatpush.msrb.mxu3 %v183_v5  ;;  %v338_v17 = vld [vmem:[#allocation9 + $0x18] sm:$0xff]  ;;  %v247_v19 = vld [vmem:[#allocation8 + $0x10] sm:$0xff]  ;;  %v309_v24 = vld [vmem:[#allocation8 + $0x48] sm:$0xff] }
  0x19   :  { %268 = vmatpush.msrb.mxu1 %v248_v15  ;;  %v282_v20 = vld [vmem:[#allocation8 + $0x30] sm:$0xff]  ;;  %v336_v25 = vld [vmem:[#allocation9 + $0x8] sm:$0xff]  ;;  %v245_v26 = vld [vmem:[#allocation8] sm:$0xff] }
  0x1a   :  { %324 = vmatpush.msra.mxu3 %v311_v6  ;;  %v337_v21 = vld [vmem:[#allocation9 + $0x10] sm:$0xff]  ;;  %v280_v27 = vld [vmem:[#allocation8 + $0x20] sm:$0xff]  ;;  %v488_v31 = vld [vmem:[%s760_s4] ss:$0 sm:$0xff] }
  0x1b   :  { %269 = vmatpush.msrb.mxu1 %v247_v19  ;;  %v308_v28 = vld [vmem:[#allocation8 + $0x40] sm:$0xff]  ;;  %v489_v50 = vld [vmem:[%s763_s7] ss:$0 sm:$0xff] }
  0x1c   :  { %325 = vmatpush.msra.mxu3 %v310_v18  ;;  %v335_v29 = vld [vmem:[#allocation9] sm:$0xff]  ;;  %v403_v3 = vld [vmem:[%s764_s8] sm:$0x1]  ;;  %s628_s8 = smov [#allocation11]  }
  0x1d   :  { %459 = vmatmul.msk.f32.gmra.mxu2 %vm103_vm0, %v101_v4  ;;  %270 = vmatpush.msrb.mxu1 %v246_v22  ;;  %s438_s25 = sshll.u32 %s628_s8, 4  ;;  %s439_s25 = int_to_ptr.vmem [resolvable:$true] %s438_s25 }
  0x1e   :  { %460 = vmatmul.msk.f32.vlgmr.msrb.gmra.mxu3 %vm103_vm0, %v100_v1 }
  0x1f   :  { %453 = vmatmul.msk.f32.gmra.mxu0 %vm103_vm0, %v101_v4  ;;  %326 = vmatpush.msra.mxu3 %v309_v24 }
  0x20   :  { %271 = vmatpush.msrb.mxu1 %v245_v26 }
  0x21   :  { %327 = vmatpush.msra.mxu3 %v308_v28 }
  0x26   :  { %461 = vmatmul.msk.f32.gmra.mxu3 %vm103_vm0, %v101_v4 }
  0x94   :  { %v127_v8 = vpop.f32.mrf.mxu0 }
  0x95   :  { %v152_v11 = vpop.f32.mrf.mxu1 }
  0x98   :  { %v177_v7 = vpop.f32.mrf.mxu2 }
  0x99   :  { %v155_v10 = vpop.f32.mrf.mxu3 }
  0x9c   :  { %v130_v12 = vpop.f32.mrf.mxu0 }
  0xa0   :  { %v180_v9 = vpop.f32.mrf.mxu2 }
  0xa1   :  { %224 = vmatpush.msrb.mxu0 %v180_v9  ;;  %475 = vmatpush.msrb.mxu2 %v180_v9  ;;  %v201_v30 = vpop.f32.mrf.mxu3 }
  0xa3   :  { %225 = vmatpush.msrb.mxu0 %v177_v7  ;;  %476 = vmatpush.msrb.mxu2 %v177_v7  ;;  %v410_v7 = vstv %s765_s9  ;;  %s440_s9 = sshll.u32 %s766_s10, 4  ;;  %s441_s9 = int_to_ptr.hbm [resolvable:$true] %s440_s9 }
  0xa5   :  { %226 = vmatpush.msrb.mxu0 %v155_v10  ;;  %477 = vmatpush.msrb.mxu2 %v155_v10 }
  0xa7   :  { %227 = vmatpush.msrb.mxu0 %v152_v11  ;;  %478 = vmatpush.msrb.mxu2 %v152_v11 }
  0xa9   :  { %228 = vmatpush.msrb.mxu0 %v130_v12  ;;  %479 = vmatpush.msrb.mxu2 %v130_v12  ;;  %v204_v35 = vpop.f32.mrf.mxu3 }
  0xab   :  { %229 = vmatpush.msrb.mxu0 %v127_v8  ;;  %480 = vmatpush.msrb.mxu2 %v127_v8 }
  0xac   :  { %462 = vmatmul.msk.f32.vlgmr.msrb.gmra.mxu0 %vm207_vm1, %v719_v13  ;;  %463 = vmatmul.msk.f32.vlgmr.msrb.gmra.mxu2 %vm207_vm1, %v721_v14 }
  0xad   :  { %296 = vmatpush.msra.mxu2 %v283_v16  ;;  %351 = vmatpush.msra.mxu0 %v338_v17 }
  0xaf   :  { %297 = vmatpush.msra.mxu2 %v282_v20  ;;  %352 = vmatpush.msra.mxu0 %v337_v21 }
  0xb1   :  { %298 = vmatpush.msra.mxu2 %v281_v23  ;;  %353 = vmatpush.msra.mxu0 %v336_v25 }
  0xb3   :  { %299 = vmatpush.msra.mxu2 %v280_v27  ;;  %354 = vmatpush.msra.mxu0 %v335_v29 }
 0x129   :  { %v231_v32 = vpop.f32.mrf.mxu0 }
 0x12a   :  { %v232_v33 = vadd.f32 %v231_v32, %v201_v30 }
 0x12c   :  { %v241_v34 = vadd.f32 %v488_v31, %v232_v33 }
 0x12e   :  { %v243_v36 = vmax.f32 %v241_v34, 0.0 }
 0x12f   :  { %v234_v37 = vpop.f32.mrf.mxu2 }
 0x130   :  { %464 = vmatmul.msk.f32.vlgmr.msrb.gmra.mxu1 %vm249_vm2, %v243_v36  ;;  %466 = vmatmul.msk.f32.vlgmr.msra.gmra.mxu2 %vm249_vm2, %v243_v36  ;;  %v235_v38 = vadd.f32 %v234_v37, %v204_v35 }
 0x131   :  { %468 = vmatmul.msk.f32.vlgmr.msra.gmra.mxu3 %vm249_vm2, %v243_v36  ;;  %470 = vmatmul.msk.f32.vlgmr.msra.gmra.mxu0 %vm249_vm2, %v243_v36 }
 0x132   :  { %v242_v39 = vadd.f32 %v488_v31, %v235_v38 }
 0x134   :  { %v244_v40 = vmax.f32 %v242_v39, 0.0 }
 0x138   :  { %465 = vmatmul.msk.f32.gmra.mxu1 %vm249_vm2, %v244_v40  ;;  %467 = vmatmul.msk.f32.gmra.mxu2 %vm249_vm2, %v244_v40 }
 0x139   :  { %469 = vmatmul.msk.f32.gmra.mxu3 %vm249_vm2, %v244_v40  ;;  %471 = vmatmul.msk.f32.gmra.mxu0 %vm249_vm2, %v244_v40 }
 0x1ad   :  { %v273_v43 = vpop.f32.mrf.mxu1 }
 0x1ae   :  { %v356_v47 = vpop.f32.mrf.mxu0 }
 0x1b3   :  { %v301_v42 = vpop.f32.mrf.mxu2 }
 0x1b4   :  { %v329_v41 = vpop.f32.mrf.mxu3 }
 0x1b5   :  { %v276_v46 = vpop.f32.mrf.mxu1 }
 0x1b6   :  { %v359_v52 = vpop.f32.mrf.mxu0 }
 0x1bb   :  { %v304_v45 = vpop.f32.mrf.mxu2 }
 0x1bc   :  { %v332_v44 = vpop.f32.mrf.mxu3 }
 0x1bd   :  { %372 = vmatpush.msra.mxu1 %v332_v44 }
 0x1bf   :  { %373 = vmatpush.msra.mxu1 %v329_v41 }
 0x1c1   :  { %374 = vmatpush.msra.mxu1 %v304_v45 }
 0x1c3   :  { %375 = vmatpush.msra.mxu1 %v301_v42 }
 0x1c5   :  { %376 = vmatpush.msra.mxu1 %v276_v46 }
 0x1c7   :  { %377 = vmatpush.msra.mxu1 %v273_v43 }
 0x1c8   :  { %472 = vmatmul.msk.f32.vlgmr.msra.gmra.mxu1 %vm207_vm1, %v719_v13 }
 0x1d0   :  { %473 = vmatmul.msk.f32.gmra.mxu1 %vm207_vm1, %v721_v14 }
 0x245   :  { %v379_v48 = vpop.f32.mrf.mxu1 }
 0x246   :  { %v380_v49 = vadd.f32 %v379_v48, %v356_v47 }
 0x248   :  { %v389_v51 = vadd.f32 %v489_v50, %v380_v49 }
 0x24a   :  { %v391_v55 = vmax.f32 %v389_v51, 0.0 }
 0x24c   :  { %v393_v58 = vsel %vm249_vm2, %v391_v55, 0.0 }
 0x24d   :  { %v382_v53 = vpop.f32.mrf.mxu1 }
 0x24e   :  { %v383_v54 = vadd.f32 %v382_v53, %v359_v52 }
 0x250   :  { %v390_v56 = vadd.f32 %v489_v50, %v383_v54 }
 0x252   :  { %v392_v57 = vmax.f32 %v390_v56, 0.0 }
 0x254   :  { %v394_v59 = vsel %vm249_vm2, %v392_v57, 0.0 }
 0x255   :  { %v395_v60 = vadd.f32 %v394_v59, %v393_v58 }
 0x257   :  { %v396_v61 = vrot.slane %v395_v60, 4 }
 0x259   :  { %v397_v62 = vadd.f32 %v396_v61, %v395_v60 }
 0x25b   :  { %v398_v63 = vrot.slane %v397_v62, 2 }
 0x25d   :  { %v399_v0 = vadd.f32 %v398_v63, %v397_v62 }
 0x25f   :  { %v400_v1 = vrot.slane %v399_v0, 1 }
 0x261   :  { %v401_v2 = vadd.f32 %v400_v1, %v399_v0 }
 0x263   :  { %v402_v4 = vmul.f32 0.0625, %v401_v2 }
 0x265   :  { %v404_v5 = vmul.f32 %v403_v3, %v402_v4 }
 0x267   :  { %v406_v6 = vsel %vm405_vm3, %v404_v5, 0.0 }
 0x268   :  { %407 = vadd.xlane.f32.xlu0 %v406_v6 }
 0x2db   :  { %v408_v8 = vpop.xlane.xlu0 %407 }
 0x2dc   :  { %v411_v9 = vadd.f32 %v410_v7, %v408_v8 }
 0x2de   :  { %v412_v10 = vsub.f32 0.0, %v411_v9 }
 0x2e0   :  { %v413_v11 = vmul.f32 1.442695, %v412_v10 }
 0x2e2   :  { %490 = vpow2.f32 %v413_v11 }
 0x2e8   :  { %v491_v12 = vpop.eup %490 }
 0x2e9   :  { %v415_v13 = vadd.f32 1.0, %v491_v12 }
 0x2eb   :  { %492 = vrcp.f32 %v415_v13  ;;  %v427_v17 = vand.u32 2147483648, %v415_v13  ;;  %v425_v19 = vand.u32 2147483647, %v415_v13  ;;  %vm421_vm5 = vweird.f32 %v415_v13 }
 0x2ed   :  { %v428_v21 = vor.u32 1.1754944e-38, %v427_v17  ;;  %vm426_vm8 = vcmp.eq.f32.partialorder %v425_v19, 8.507059e+37 }
 0x2f1   :  { %v493_v14 = vpop.eup %492 }
 0x2f2   :  { %v417_v15 = vmul.f32 %v493_v14, %v415_v13  ;;  %vm422_vm4 = vweird.f32 %v493_v14 }
 0x2f3   :  { %vm423_vm6 = vmor %vm421_vm5, %vm422_vm4 }
 0x2f4   :  { %v418_v16 = vsub.f32 1.0, %v417_v15 }
 0x2f6   :  { %v419_v18 = vmul.f32 %v493_v14, %v418_v16 }
 0x2f8   :  { %v420_v20 = vadd.f32 %v493_v14, %v419_v18 }
 0x2fa   :  { %v424_v22 = vsel %vm423_vm6, %v493_v14, %v420_v20 }
 0x2fb   :  { %v429_v23 = vsel %vm426_vm8, %v428_v21, %v424_v22 }
 0x2fc   :  { %432 = vst.msk [vmem:[#allocation11] sm:$0x1] %vm431_vm7, %v429_v23 }
 0x2fd   :  { %443 = dma.vmem_to_hbm [thread:$0]  %s439_s25, 16, %s441_s9, [#allocation5]  }
 0x2fe   :  { %620 = dma.done.wait [#allocation5], 16  }
 0x2ff   :  { %621 = vsyncadd [#allocation5], 4294967280 }
 0x300   :  { %448 = vsyncpa [#allocation4], 1 }
 0x301   :  { %449 = vsyncpa [#allocation7], 1 }
 0x302   :  { %450 = vsyncpa [#allocation10], 1 }
 0x303   :  { %451 = vsyncpa [#allocation5], 1 }

</bundles_post_ra>
